<compile_context>
chip_gen: v5e
topology: v5e:2x2
jax: 0.10.0
libtpu: 0.0.40
codegen_flags: <defaults>
</compile_context>

<pallas_src>
import functools

import numpy as np
import jax
import jax.numpy as jnp
from jax.experimental import pallas as pl
from jax.experimental.pallas import tpu as pltpu


def _ldam_kernel(x_ref, t_ref, m_ref, out_ref, *, n_rows, block_rows):
    step = pl.program_id(0)

    x = x_ref[...].astype(jnp.float32)        # (TB, C) logits
    t = t_ref[...]                            # (TB, 1) int32 targets
    m = m_ref[...]                            # (1,  C) f32 per-class margins
    tb, c = x.shape

    # one-hot(target) via a (1, C) iota broadcast against the (TB, 1) targets
    # (scatter_ equivalent); no full (TB, C) iota is materialized.
    col = jax.lax.broadcasted_iota(jnp.int32, (1, c), 1)
    onehot = col == t                         # (TB, C) bool

    # At the only column where the margin applies (j == target[i]),
    # m[j] == m_list[target[i]] == batch_m[i], so:
    #   output = where(onehot, x - m, x)
    xm = x - m                                # broadcast subtract (VPU)
    out = jnp.where(onehot, xm, x)            # (TB, C)
    # target logit of `output` == x[target] - batch_m, fused into one reduction
    tgt = jnp.sum(jnp.where(onehot, xm, 0.0), axis=1, keepdims=True)   # (TB, 1)

    # cross_entropy (no class weights): max-stabilized log-sum-exp
    mx = jnp.max(out, axis=1, keepdims=True)
    lse = jnp.log(jnp.sum(jnp.exp(out - mx), axis=1, keepdims=True)) + mx
    loss = lse - tgt                          # (TB, 1)

    # mask garbage rows of the ragged last batch block (select does not
    # propagate NaN/Inf from the unselected branch, so garbage is harmless)
    row = step * block_rows + jax.lax.broadcasted_iota(jnp.int32, (tb, 1), 0)
    loss = jnp.where(row < n_rows, loss, 0.0)

    partial = jnp.sum(loss)                   # this block's partial loss sum

    # lane-dense (1, 8, 128) output tile: partial at [0, 0, 0], zeros elsewhere.
    # Per-block tiles (instead of one resident accumulator) keep the batch axis
    # megacore-shardable; the wrapper sums the tiles and divides by B.
    r = jax.lax.broadcasted_iota(jnp.int32, (1, 8, 128), 1)
    l = jax.lax.broadcasted_iota(jnp.int32, (1, 8, 128), 2)
    out_ref[...] = jnp.where((r == 0) & (l == 0), partial, 0.0)


def ldam_loss(x, target, m_list, *, block_rows=None):
    """LDAM loss forward (s == 1, weight=None).

    x: (B, C) float logits -- pass bf16 to halve HBM traffic, it is kept in its
       input dtype in HBM and cast to f32 inside the kernel.
    target: (B,) integer class ids.
    m_list: (C,) float per-class margins.
    Returns a scalar f32 (mean cross-entropy of the margin-adjusted logits).
    """
    B, C = x.shape
    if not jnp.issubdtype(x.dtype, jnp.floating):
        x = x.astype(jnp.float32)

    # Row tile: sized so each whole-tile f32 temporary inside the kernel is
    # ~2 MiB (the dominant VMEM consumer), capped at 2048 rows, multiple of 8.
    lane_width = pl.cdiv(C, 128) * 128        # physical lane-tile width (sizing only)
    if block_rows is None:
        tb = (512 * 1024) // lane_width
        tb = max(8, min(2048, (tb // 8) * 8))
    else:
        tb = max(8, (block_rows // 8) * 8)
    tb = min(tb, ((B + 7) // 8) * 8)          # don't exceed the (rounded) batch

    n_blocks = pl.cdiv(B, tb)                 # ragged last block handled in-kernel

    t2 = target.astype(jnp.int32).reshape(B, 1)     # tiny
    m2 = m_list.astype(jnp.float32).reshape(1, C)   # tiny

    kernel = functools.partial(_ldam_kernel, n_rows=B, block_rows=tb)

    partials = pl.pallas_call(
        kernel,
        out_shape=jax.ShapeDtypeStruct((n_blocks, 8, 128), jnp.float32),
        grid=(n_blocks,),
        in_specs=[
            pl.BlockSpec((tb, C), lambda i: (i, 0)),   # x rows, streamed, no HBM pad
            pl.BlockSpec((tb, 1), lambda i: (i, 0)),   # targets
            pl.BlockSpec((1, C), lambda i: (0, 0)),    # margins, resident
        ],
        out_specs=pl.BlockSpec((1, 8, 128), lambda i: (i, 0, 0)),  # per-block partial
        compiler_params=pltpu.CompilerParams(
            dimension_semantics=("parallel",),          # megacore-shardable on v7x
            vmem_limit_bytes=48 * 1024 * 1024,
        ),
    )(x, t2, m2)

    return jnp.sum(partials) / B


def make_m_list(cls_num_list, max_m=0.3):
    m = 1.0 / np.sqrt(np.sqrt(np.asarray(cls_num_list, dtype=np.float64)))
    m = m * (max_m / np.max(m))
    return jnp.asarray(m, dtype=jnp.float32)


def _reference(x, target, m_list):
    """Pure-JAX reference with the module's semantics (s == 1, weight=None)."""
    B, C = x.shape
    xf = x.astype(jnp.float32)
    onehot = jax.nn.one_hot(target, C, dtype=jnp.float32)
    batch_m = (onehot @ m_list).reshape(B, 1)
    out = jnp.where(onehot > 0, xf - batch_m, xf)
    return jnp.mean(jax.nn.logsumexp(out, axis=1) - jnp.sum(out * onehot, axis=1))


if __name__ == "__main__":
    key = jax.random.PRNGKey(0)

    # (aligned case, ragged case) -- the second exercises the ragged batch
    # block and the non-128-multiple class width.
    for B, C in [(8, 16), (10, 37)]:
        key, kx, kt = jax.random.split(key, 3)
        x = jax.random.normal(kx, (B, C), dtype=jnp.float32)
        target = jax.random.randint(kt, (B,), 0, C, dtype=jnp.int32)

        # deterministic imbalanced class-count list, as the module's __init__ expects
        cls_num_list = [int(1000 / (i + 1)) for i in range(C)]
        m_list = make_m_list(cls_num_list, max_m=0.3)

        loss = ldam_loss(x, target, m_list)
        jax.block_until_ready(loss)

        ref = _reference(x, target, m_list)
        assert jnp.allclose(loss, ref, atol=1e-4, rtol=1e-5), (B, C, float(loss), float(ref))

    print("KERNEL_OK")
</pallas_src>

<mosaic_0001>
module attributes {stable_mosaic.version = 11 : i64} {
  func.func @_ldam_kernel(%arg0: i32, %arg1: memref<8x16xf32, #tpu.memory_space<vmem>>, %arg2: memref<8x1xi32, #tpu.memory_space<vmem>>, %arg3: memref<1x16xf32, #tpu.memory_space<vmem>>, %arg4: memref<1x8x128xf32, #tpu.memory_space<vmem>>) attributes {dimension_semantics = [#tpu.dimension_semantics<parallel>], iteration_bounds = array<i64: 1>, scalar_prefetch = 0 : i64, scratch_operands = 0 : i64, tpu.core_type = #tpu.core_type<tc>, window_params = [{transform_indices = @transform_0, window_bounds = array<i64: 8, 16>}, {transform_indices = @transform_1, window_bounds = array<i64: 8, 1>}, {pipeline_mode = #tpu.pipeline_mode<synchronous>, transform_indices = @transform_2, window_bounds = array<i64: 1, 16>}, {transform_indices = @transform_3, window_bounds = array<i64: 1, 8, 128>}]} {
    %c0 = arith.constant 0 : index
    %c0_0 = arith.constant 0 : index
    %0 = vector.load %arg1[%c0, %c0_0] : memref<8x16xf32, #tpu.memory_space<vmem>>, vector<8x16xf32>
    %c0_1 = arith.constant 0 : index
    %c0_2 = arith.constant 0 : index
    %1 = vector.load %arg2[%c0_1, %c0_2] : memref<8x1xi32, #tpu.memory_space<vmem>>, vector<8x1xi32>
    %c0_3 = arith.constant 0 : index
    %c0_4 = arith.constant 0 : index
    %2 = vector.load %arg3[%c0_3, %c0_4] : memref<1x16xf32, #tpu.memory_space<vmem>>, vector<1x16xf32>
    %3 = tpu.iota {dimensions = array<i32: 1>} : vector<1x16xi32>
    %4 = vector.broadcast %3 : vector<1x16xi32> to vector<8x16xi32>
    %5 = vector.broadcast %1 : vector<8x1xi32> to vector<8x16xi32>
    %6 = arith.cmpi eq, %4, %5 : vector<8x16xi32>
    %7 = vector.broadcast %2 : vector<1x16xf32> to vector<8x16xf32>
    %8 = arith.subf %0, %7 : vector<8x16xf32>
    %9 = arith.select %6, %8, %0 : vector<8x16xi1>, vector<8x16xf32>
    %cst = arith.constant 0.000000e+00 : f32
    %10 = vector.broadcast %cst : f32 to vector<8x16xf32>
    %11 = arith.select %6, %8, %10 : vector<8x16xi1>, vector<8x16xf32>
    %cst_5 = arith.constant dense<0.000000e+00> : vector<8xf32>
    %12 = vector.multi_reduction <add>, %11, %cst_5 [1] : vector<8x16xf32> to vector<8xf32>
    %13 = vector.shape_cast %12 : vector<8xf32> to vector<8x1xf32>
    %cst_6 = arith.constant dense<0xFF800000> : vector<8xf32>
    %14 = vector.multi_reduction <maximumf>, %9, %cst_6 [1] : vector<8x16xf32> to vector<8xf32>
    %15 = vector.shape_cast %14 : vector<8xf32> to vector<8x1xf32>
    %16 = vector.broadcast %15 : vector<8x1xf32> to vector<8x16xf32>
    %17 = arith.subf %9, %16 : vector<8x16xf32>
    %18 = math.exp %17 : vector<8x16xf32>
    %cst_7 = arith.constant dense<0.000000e+00> : vector<8xf32>
    %19 = vector.multi_reduction <add>, %18, %cst_7 [1] : vector<8x16xf32> to vector<8xf32>
    %20 = vector.shape_cast %19 : vector<8xf32> to vector<8x1xf32>
    %21 = math.log %20 : vector<8x1xf32>
    %22 = arith.addf %21, %15 : vector<8x1xf32>
    %23 = arith.subf %22, %13 : vector<8x1xf32>
    %c8_i32 = arith.constant 8 : i32
    %24 = arith.muli %arg0, %c8_i32 : i32
    %25 = tpu.iota {dimensions = array<i32: 0>} : vector<8x1xi32>
    %26 = vector.broadcast %24 : i32 to vector<8x1xi32>
    %27 = arith.addi %26, %25 : vector<8x1xi32>
    %c8_i32_8 = arith.constant 8 : i32
    %28 = vector.broadcast %c8_i32_8 : i32 to vector<8x1xi32>
    %29 = arith.cmpi slt, %27, %28 : vector<8x1xi32>
    %cst_9 = arith.constant 0.000000e+00 : f32
    %30 = vector.broadcast %cst_9 : f32 to vector<8x1xf32>
    %31 = arith.select %29, %23, %30 : vector<8x1xi1>, vector<8x1xf32>
    %32 = vector.shape_cast %31 : vector<8x1xf32> to vector<1x8x1xf32>
    %cst_10 = arith.constant dense<0.000000e+00> : vector<1xf32>
    %33 = vector.multi_reduction <add>, %32, %cst_10 [1, 2] : vector<1x8x1xf32> to vector<1xf32>
    %34 = vector.shape_cast %33 : vector<1xf32> to vector<1x1x1xf32>
    %35 = vector.extract %34[0, 0, 0] : f32 from vector<1x1x1xf32>
    %36 = tpu.iota {dimensions = array<i32: 1>} : vector<1x8x128xi32>
    %37 = tpu.iota {dimensions = array<i32: 2>} : vector<1x8x128xi32>
    %c0_i32 = arith.constant 0 : i32
    %38 = vector.broadcast %c0_i32 : i32 to vector<1x8x128xi32>
    %39 = arith.cmpi eq, %36, %38 : vector<1x8x128xi32>
    %c0_i32_11 = arith.constant 0 : i32
    %40 = vector.broadcast %c0_i32_11 : i32 to vector<1x8x128xi32>
    %41 = arith.cmpi eq, %37, %40 : vector<1x8x128xi32>
    %42 = arith.andi %39, %41 : vector<1x8x128xi1>
    %cst_12 = arith.constant 0.000000e+00 : f32
    %43 = vector.broadcast %35 : f32 to vector<1x8x128xf32>
    %44 = vector.broadcast %cst_12 : f32 to vector<1x8x128xf32>
    %45 = arith.select %42, %43, %44 : vector<1x8x128xi1>, vector<1x8x128xf32>
    %c0_13 = arith.constant 0 : index
    %c0_14 = arith.constant 0 : index
    %c0_15 = arith.constant 0 : index
    %46 = vector.load %arg4[%c0_13, %c0_14, %c0_15] : memref<1x8x128xf32, #tpu.memory_space<vmem>>, vector<1x8x128xf32>
    tpu.vector_store %arg4[%c0_13, %c0_14, %c0_15], %45 {strides = array<i32>} : memref<1x8x128xf32, #tpu.memory_space<vmem>>, vector<1x8x128xf32>,
    return
  }
  func.func @transform_0(%arg0: i32) -> (i32, i32) {
    %c0_i32 = arith.constant 0 : i32
    %c0_i32_0 = arith.constant 0 : i32
    return %arg0, %c0_i32 : i32, i32
  }
  func.func @transform_1(%arg0: i32) -> (i32, i32) {
    %c0_i32 = arith.constant 0 : i32
    %c0_i32_0 = arith.constant 0 : i32
    return %arg0, %c0_i32 : i32, i32
  }
  func.func @transform_2(%arg0: i32) -> (i32, i32) {
    %c0_i32 = arith.constant 0 : i32
    %c0_i32_0 = arith.constant 0 : i32
    %c0_i32_1 = arith.constant 0 : i32
    return %c0_i32, %c0_i32_0 : i32, i32
  }
  func.func @transform_3(%arg0: i32) -> (i32, i32, i32) {
    %c0_i32 = arith.constant 0 : i32
    %c0_i32_0 = arith.constant 0 : i32
    %c0_i32_1 = arith.constant 0 : i32
    return %arg0, %c0_i32, %c0_i32_0 : i32, i32, i32
  }
}

</mosaic_0001>

<bundles_post_ra>
// kernel: tpu_custom_call.1
= control target key start
LH: loop header
LB: loop body
LE: loop exit
PB: predicated region body
PF: predicated region fallthrough
CT: control target
= control target key end

     0   :  { %s157_s0 = inlined_call_operand.vmem [shape: f32[8,16], index: 0, kind: input, shape index: {}]   ;;  %s158_s1 = inlined_call_operand.vmem [shape: s32[8,1], index: 1, kind: input, shape index: {}]   ;;  %s159_s2 = inlined_call_operand.vmem [shape: f32[1,16], index: 2, kind: input, shape index: {}]   ;;  %s160_s3 = inlined_call_operand.hbm [shape: f32[1,8,128], index: 3, kind: output, shape index: {}]  }
   0x1   :  { %v16_v0 = vld [vmem:[%s158_s1] sm:$0xff] }
   0x2   :  { %8 = vsyncpa [#allocation3], 0  ;;  %v123_v1 = vmov 0   ;;  %v18_v2 = vlaneseq  ;;  %v92_v3 = vld [vmem:[%s159_s2] ss:$0 sm:$0xff]  ;;  %vm30_vm0 = vcmask 130048  }
   0x3   :  { %91 = vset.pattern.permute.xlu0 %v123_v1  ;;  %v15_v4 = vld [vmem:[%s157_s0] sm:$0xff]  ;;  %vm54_vm2 = vcmask 7168   ;;  %s124_s0 = smov [#allocation2]   ;;  %s78_s19 = sshll.u32 %s160_s3, 4  ;;  %s79_s19 = int_to_ptr.hbm [resolvable:$true] %s78_s19 }
   0x4   :  { %21 = vperm.xlu0 %91, %v16_v0   ;;  %v19_v5 = vand.u32 127, %v18_v2  ;;  %v27_v6 = vsub.f32 %v15_v4, %v92_v3  ;;  %v49_v31 = vshrl.u32 %v18_v2, 7  ;;  %s76_s1 = sshll.u32 %s124_s0, 4  ;;  %s77_s1 = int_to_ptr.vmem [resolvable:$true] %s76_s1 }
   0x6   :  { %vm65_vm3 = vcmp.eq.s32.totalorder %v49_v31, 0  ;;  %vm66_vm4 = vcmp.eq.s32.totalorder %v19_v5, 0 }
   0x7   :  { %vm67_vm5 = vmand %vm65_vm3, %vm66_vm4 }
  0x76   :  { %v22_v7 = vpop.permute.xlu0 %21 }
  0x77   :  { %vm23_vm1 = vcmp.eq.s32.totalorder %v19_v5, %v22_v7 }
  0x78   :  { %v28_v8 = vsel %vm23_vm1, %v27_v6, %v15_v4  ;;  %v29_v9 = vsel %vm23_vm1, %v27_v6, 0.0 }
  0x79   :  { %v34_v10 = vsel %vm30_vm0, %v28_v8, -inf  ;;  %v31_v16 = vsel %vm30_vm0, %v29_v9, 0.0 }
  0x7a   :  { %35 = vmax.xlane.f32.xlu0 %v34_v10 }
  0xed   :  { %v36_v11 = vpop.xlane.xlu0 %35 }
  0xee   :  { %v37_v12 = vsub.f32 %v28_v8, %v36_v11 }
  0xf0   :  { %v38_v13 = vmul.f32 1.442695, %v37_v12 }
  0xf2   :  { %93 = vpow2.f32 %v38_v13 }
  0xf8   :  { %v94_v14 = vpop.eup %93 }
  0xf9   :  { %v40_v15 = vsel %vm30_vm0, %v94_v14, 0.0 }
  0xfa   :  { %41 = vadd.xlane.f32.xlu1 %v40_v15 }
 0x102   :  { %32 = vadd.xlane.f32.xlu1 %v31_v16 }
 0x16d   :  { %v42_v17 = vpop.xlane.xlu1 %41 }
 0x16e   :  { %95 = vlog2.f32 %v42_v17 }
 0x174   :  { %v96_v18 = vpop.eup %95 }
 0x175   :  { %v44_v19 = vmul.f32 0.6931472, %v96_v18  ;;  %v33_v21 = vpop.xlane.xlu1 %32 }
 0x177   :  { %v45_v20 = vadd.f32 %v44_v19, %v36_v11 }
 0x179   :  { %v46_v22 = vsub.f32 %v45_v20, %v33_v21 }
 0x17b   :  { %v55_v23 = vsel %vm54_vm2, %v46_v22, 0.0 }
 0x17c   :  { %56 = vadd.xlane.f32.xlu2 %v55_v23 }
 0x1ef   :  { %v57_v24 = vpop.xlane.xlu2 %56 }
 0x1f0   :  { %v58_v25 = vrot.slane %v57_v24, 4 }
 0x1f2   :  { %v59_v26 = vadd.f32 %v58_v25, %v57_v24 }
 0x1f4   :  { %v60_v27 = vrot.slane %v59_v26, 2 }
 0x1f6   :  { %v61_v28 = vadd.f32 %v60_v27, %v59_v26 }
 0x1f8   :  { %v62_v29 = vrot.slane %v61_v28, 1 }
 0x1fa   :  { %v63_v30 = vadd.f32 %v62_v29, %v61_v28 }
 0x1fc   :  { %87 = vpush %v63_v30 }
 0x22d   :  { %s88_s20 = spop %87 }
 0x22e   :  { %v68_v32 = vstv %s88_s20 }
 0x22f   :  { %v69_v33 = vsel %vm67_vm5, %v68_v32, 0.0 }
 0x230   :  { %70 = vst [vmem:[#allocation2] sm:$0xff] %v69_v33 }
 0x231   :  { %81 = dma.vmem_to_hbm [thread:$0]  %s77_s1, 128, %s79_s19, [#allocation3]  }
 0x232   :  { %121 = dma.done.wait [#allocation3], 128  }
 0x233   :  { %122 = vsyncadd [#allocation3], 4294967168 }
 0x234   :  { %86 = vsyncpa [#allocation3], 1 }

</bundles_post_ra>
